<compile_context>
chip_gen: v5e
topology: v5e:2x2
jax: 0.10.0
libtpu: 0.0.40
codegen_flags: <defaults>
</compile_context>

<pallas_src>
import jax
import jax.numpy as jnp
from jax import lax
from jax.experimental import pallas as pl
from jax.experimental.pallas import tpu as pltpu


# ----------------------------------------------------------------------------
# pltpu.roll direction probe (tiny one-off kernel, cached).  We only rely on
# roll being a circular rotation; the probe pins down the backend's direction
# convention so tap / pool shifts always pair with the right weight columns.
# ----------------------------------------------------------------------------
_ROLL_SIGN = None


def _get_roll_sign():
    global _ROLL_SIGN
    if _ROLL_SIGN is None:
        def probe(x_ref, o_ref):
            o_ref[...] = pltpu.roll(x_ref[...], shift=1, axis=1)

        x = jnp.arange(8 * 256, dtype=jnp.float32).reshape(8, 256)
        y = pl.pallas_call(
            probe, out_shape=jax.ShapeDtypeStruct((8, 256), jnp.float32))(x)
        # jnp.roll semantics: y[:, i] = x[:, i - shift]  =>  y[:, 1] == x[:, 0]
        _ROLL_SIGN = 1 if bool(jnp.array_equal(y[:, 1], x[:, 0])) else -1
    return _ROLL_SIGN


# ----------------------------------------------------------------------------
# Fused kernel: ResidualBlock(in_c -> out_c), ResidualBlock(out_c -> out_c),
# MaxPool2d(2,2).  One grid step = one batch element.
# ----------------------------------------------------------------------------
def make_encoder_kernel(H, W, cred, roll_sign):
    HW = H * W
    H2, W2 = H // 2, W // 2
    inv_hw = 1.0 / float(HW)
    taps = [(dy - 1, dx - 1) for dy in range(3) for dx in range(3)]

    def kernel(x_ref,
               w1a_ref, w2a_ref, w3a_ref, va_ref,
               w1b_ref, w2b_ref, w3b_ref, vb_ref,
               y_ref, p_ref):
        # flat-position (h, w) indices, used to build tap edge masks in-kernel
        pos = lax.broadcasted_iota(jnp.int32, (1, HW), 1)
        hh = pos // W
        ww = pos - hh * W

        def shifted(x, s):
            # z[:, p] = x[:, (p + s) mod HW]
            return pltpu.roll(x, shift=(-s * roll_sign) % HW, axis=1)

        def im2col(x):
            """(C, HW) f32 -> (9*C, HW) bf16 patch (zero-padded 3x3 taps)."""
            pieces = []
            for oy, ox in taps:
                if oy == 0 and ox == 0:
                    tap = x                       # center tap, no mask needed
                else:
                    tap = shifted(x, oy * W + ox)
                    valid = ((hh + oy >= 0) & (hh + oy < H) &
                             (ww + ox >= 0) & (ww + ox < W))
                    tap = jnp.where(valid, tap, 0.0)   # zero padding + no wrap
                pieces.append(tap)
            return jnp.concatenate(pieces, axis=0).astype(jnp.bfloat16)

        def conv3x3(x, w_ref, t):
            """conv3x3(pad=1) with BN folded: (Cin, HW) -> (Cout, HW) f32."""
            patch = im2col(x)
            return jnp.dot(w_ref[...], patch,
                           preferred_element_type=jnp.float32) + t

        def resblock(x, w1_ref, w2_ref, w3_ref, v_ref):
            t1 = v_ref[:, 0:1]
            t2 = v_ref[:, 1:2]
            t3 = v_ref[:, 2:3]
            se1t = v_ref[:, 3:3 + cred]              # (Cout, cred) = sew1^T
            se2 = v_ref[:, 3 + cred:3 + 2 * cred]    # (Cout, cred) = sew2
            # conv1 (3x3) -> BN -> ReLU
            x1 = jnp.maximum(conv3x3(x, w1_ref, t1), 0.0)
            # conv2 (3x3) -> BN
            x2 = conv3x3(x1, w2_ref, t2)
            # conv3 (1x1) -> BN
            x3 = jnp.dot(w3_ref[...], x.astype(jnp.bfloat16),
                         preferred_element_type=jnp.float32) + t3
            # SE: global avg pool -> fc1 -> ReLU -> fc2 -> sigmoid -> scale
            m = jnp.sum(x3, axis=1, keepdims=True) * inv_hw            # (Cout,1)
            h = jnp.maximum(jnp.sum(se1t * m, axis=0, keepdims=True), 0.0)  # (1,cred)
            yv = jax.nn.sigmoid(jnp.sum(se2 * h, axis=1, keepdims=True))    # (Cout,1)
            x3 = x3 * yv
            # residual add + ReLU
            return jnp.maximum(x2 + x3, 0.0)

        y = resblock(x_ref[0], w1a_ref, w2a_ref, w3a_ref, va_ref)
        y = resblock(y, w1b_ref, w2b_ref, w3b_ref, vb_ref)
        y_ref[0] = y

        # Fused MaxPool2d(2, stride=2): elementwise max over the 4 window
        # shifts, then pick the window anchors with a 0/1 selection matmul.
        # (wrapped values at non-anchor positions are never selected)
        m = y
        for s in (1, W, W + 1):
            m = jnp.maximum(m, shifted(y, s))
        rows = lax.broadcasted_iota(jnp.int32, (HW, H2 * W2), 0)
        cols = lax.broadcasted_iota(jnp.int32, (HW, H2 * W2), 1)
        qh = cols // W2
        qw = cols - qh * W2
        sel = (rows == 2 * qh * W + 2 * qw).astype(jnp.float32)
        p_ref[0] = jnp.dot(m, sel, preferred_element_type=jnp.float32)

    return kernel


# ----------------------------------------------------------------------------
# Parameter folding / packing (BN scale folded into weights; shifts + SE
# weights packed into a single small f32 array per resblock).
# ----------------------------------------------------------------------------
def _pad_ci(w):
    ci = w.shape[1]
    ci_p = ((ci + 7) // 8) * 8
    if ci_p != ci:
        w = jnp.pad(w, ((0, 0), (0, ci_p - ci), (0, 0), (0, 0)))
    return w


def _fold_and_pack(p, eps=1e-5):
    """-> [wc1 bf16 (Co,9Ci), wc2 bf16 (Co,9Co), wc3 bf16 (Co,Ci), vecs f32]."""
    def fold(w, b, g, beta, mean, var):
        scale = g / jnp.sqrt(var + eps)
        shift = beta + scale * (b - mean)
        return w * scale[:, None, None, None], shift

    w1, t1 = fold(p["w1"], p["b1"], p["g1"], p["beta1"], p["m1"], p["v1"])
    w2, t2 = fold(p["w2"], p["b2"], p["g2"], p["beta2"], p["m2"], p["v2"])
    w3, t3 = fold(p["w3"], p["b3"], p["g3"], p["beta3"], p["m3"], p["v3"])
    w1, w3 = _pad_ci(w1), _pad_ci(w3)

    def im2col_weight(w):  # OIHW (co,ci,3,3) -> (co, 9*ci), matches patch order
        co, ci = w.shape[0], w.shape[1]
        return w.transpose(0, 2, 3, 1).reshape(co, 9 * ci)

    wc1 = im2col_weight(w1).astype(jnp.bfloat16)
    wc2 = im2col_weight(w2).astype(jnp.bfloat16)
    wc3 = w3[:, :, 0, 0].astype(jnp.bfloat16)
    vecs = jnp.concatenate(
        [t1[:, None], t2[:, None], t3[:, None], p["sew1"].T, p["sew2"]],
        axis=1).astype(jnp.float32)
    return [wc1, wc2, wc3, vecs]


def _const_spec(a):
    assert a.ndim == 2
    return pl.BlockSpec(a.shape, lambda b: (0, 0))


# ----------------------------------------------------------------------------
# Driver: EncoderBlock.forward on NCHW input, returns (x_out, pooled) in NCHW.
# ----------------------------------------------------------------------------
def encoder_block(x, p1, p2):
    B, Cin, H, W = x.shape
    Cout = p1["w1"].shape[0]
    cred = p1["sew1"].shape[0]
    assert H % 2 == 0 and W % 2 == 0
    HW, H2, W2 = H * W, H // 2, W // 2

    # zero-pad input channels to a multiple of 8 (tile-aligned sublane concat)
    cin_p = ((Cin + 7) // 8) * 8
    x_flat = x.reshape(B, Cin, HW)
    if cin_p != Cin:
        x_flat = jnp.pad(x_flat, ((0, 0), (0, cin_p - Cin), (0, 0)))

    args1 = _fold_and_pack(p1)
    args2 = _fold_and_pack(p2)

    kernel = make_encoder_kernel(H, W, cred, _get_roll_sign())

    in_specs = ([pl.BlockSpec((1, cin_p, HW), lambda b: (b, 0, 0))]
                + [_const_spec(a) for a in args1]
                + [_const_spec(a) for a in args2])
    out_specs = [pl.BlockSpec((1, Cout, HW), lambda b: (b, 0, 0)),
                 pl.BlockSpec((1, Cout, H2 * W2), lambda b: (b, 0, 0))]
    out_shape = (jax.ShapeDtypeStruct((B, Cout, HW), jnp.float32),
                 jax.ShapeDtypeStruct((B, Cout, H2 * W2), jnp.float32))

    y_flat, pool_flat = pl.pallas_call(
        kernel,
        out_shape=out_shape,
        grid_spec=pltpu.PrefetchScalarGridSpec(
            num_scalar_prefetch=0,
            grid=(B,),
            in_specs=in_specs,
            out_specs=out_specs),
        compiler_params=pltpu.CompilerParams(
            dimension_semantics=("parallel",),
            vmem_limit_bytes=32 * 1024 * 1024),
    )(x_flat, *args1, *args2)

    return (y_flat.reshape(B, Cout, H, W),
            pool_flat.reshape(B, Cout, H2, W2))


# ----------------------------------------------------------------------------
# Deterministic parameter construction (PyTorch-style OIHW conv + BN + SE)
# ----------------------------------------------------------------------------
def init_resblock_params(key, cin, cout, reduction=16):
    cred = int(cout / reduction)
    assert cred >= 1, "out_c must be >= reduction for the SE layer"
    keys = iter(jax.random.split(key, 32))

    def nrm(shape, s=0.1):
        return (s * jax.random.normal(next(keys), shape)).astype(jnp.float32)

    def uni(shape):
        return jax.random.uniform(next(keys), shape, dtype=jnp.float32)

    def conv_bn(ci, co, k):
        return dict(w=nrm((co, ci, k, k)), b=nrm((co,)),
                    g=1.0 + nrm((co,)), beta=nrm((co,)),
                    m=nrm((co,)), v=0.5 + uni((co,)))

    c1 = conv_bn(cin, cout, 3)
    c2 = conv_bn(cout, cout, 3)
    c3 = conv_bn(cin, cout, 1)
    return dict(
        w1=c1["w"], b1=c1["b"], g1=c1["g"], beta1=c1["beta"], m1=c1["m"], v1=c1["v"],
        w2=c2["w"], b2=c2["b"], g2=c2["g"], beta2=c2["beta"], m2=c2["m"], v2=c2["v"],
        w3=c3["w"], b3=c3["b"], g3=c3["g"], beta3=c3["beta"], m3=c3["m"], v3=c3["v"],
        sew1=nrm((cred, cout), s=0.2),     # nn.Linear(cout, cred, bias=False)
        sew2=nrm((cout, cred), s=0.2),     # nn.Linear(cred, cout, bias=False)
    )


# ----------------------------------------------------------------------------
# Pure-JAX reference (correctness checking only), NCHW, inference-mode BN.
# ----------------------------------------------------------------------------
def _resblock_ref(x, p, eps=1e-5):
    dn = ("NCHW", "OIHW", "NCHW")
    hi = lax.Precision.HIGHEST

    def conv_bn(xx, w, b, g, beta, mean, var, pad):
        y = lax.conv_general_dilated(xx, w, (1, 1), pad,
                                     dimension_numbers=dn, precision=hi)
        y = y + b[None, :, None, None]
        s = (g / jnp.sqrt(var + eps))[None, :, None, None]
        return s * (y - mean[None, :, None, None]) + beta[None, :, None, None]

    x1 = jax.nn.relu(conv_bn(x, p["w1"], p["b1"], p["g1"], p["beta1"],
                             p["m1"], p["v1"], "SAME"))
    x2 = conv_bn(x1, p["w2"], p["b2"], p["g2"], p["beta2"],
                 p["m2"], p["v2"], "SAME")
    x3 = conv_bn(x, p["w3"], p["b3"], p["g3"], p["beta3"],
                 p["m3"], p["v3"], "VALID")
    m = x3.mean(axis=(2, 3))                              # (B, cout)
    h = jax.nn.relu(m @ p["sew1"].T)                      # (B, cred)
    yv = jax.nn.sigmoid(h @ p["sew2"].T)                  # (B, cout)
    x3 = x3 * yv[:, :, None, None]
    return jax.nn.relu(x2 + x3)


def _encoder_ref(x, p1, p2):
    x = _resblock_ref(x, p1)
    x = _resblock_ref(x, p2)
    B, C, H, W = x.shape
    p = x.reshape(B, C, H // 2, 2, W // 2, 2).max(axis=(3, 5))
    return x, p


# ----------------------------------------------------------------------------
if __name__ == "__main__":
    key = jax.random.PRNGKey(0)
    B, in_c, out_c, H, W = 2, 4, 32, 16, 16

    kx, k1, k2 = jax.random.split(key, 3)
    # NCHW, matching the PyTorch module's convention.
    x = jax.random.normal(kx, (B, in_c, H, W), dtype=jnp.float32)

    p1 = init_resblock_params(k1, in_c, out_c)
    p2 = init_resblock_params(k2, out_c, out_c)

    y_out, pool_out = encoder_block(x, p1, p2)
    jax.block_until_ready((y_out, pool_out))

    # correctness check against the pure-JAX reference
    y_ref, pool_ref = _encoder_ref(x, p1, p2)
    assert y_out.shape == (B, out_c, H, W)
    assert pool_out.shape == (B, out_c, H // 2, W // 2)
    tol = 5e-2 * (1.0 + float(jnp.max(jnp.abs(y_ref))))
    err_y = float(jnp.max(jnp.abs(y_out - y_ref)))
    err_p = float(jnp.max(jnp.abs(pool_out - pool_ref)))
    assert err_y < tol and err_p < tol, (err_y, err_p, tol)

    print("KERNEL_OK")
</pallas_src>

<mosaic_0001>
module attributes {stable_mosaic.version = 11 : i64} {
  func.func @probe(%arg0: memref<8x256xf32, #tpu.memory_space<vmem>>, %arg1: memref<8x256xf32, #tpu.memory_space<vmem>>) attributes {dimension_semantics = [], scalar_prefetch = 0 : i64, scratch_operands = 0 : i64, tpu.core_type = #tpu.core_type<tc>} {
    %c0 = arith.constant 0 : index
    %c0_0 = arith.constant 0 : index
    %0 = vector.load %arg0[%c0, %c0_0] : memref<8x256xf32, #tpu.memory_space<vmem>>, vector<8x256xf32>
    %c1_i32 = arith.constant 1 : i32
    %1 = tpu.dynamic_rotate %0 by %c1_i32 dim 1 : vector<8x256xf32>, i32 -> vector<8x256xf32>
    %c0_1 = arith.constant 0 : index
    %c0_2 = arith.constant 0 : index
    %2 = vector.load %arg1[%c0_1, %c0_2] : memref<8x256xf32, #tpu.memory_space<vmem>>, vector<8x256xf32>
    tpu.vector_store %arg1[%c0_1, %c0_2], %1 {strides = array<i32>} : memref<8x256xf32, #tpu.memory_space<vmem>>, vector<8x256xf32>,
    return
  }
}

</mosaic_0001>

<bundles_post_ra>
// kernel: tpu_custom_call.1
= control target key start
LH: loop header
LB: loop body
LE: loop exit
PB: predicated region body
PF: predicated region fallthrough
CT: control target
= control target key end

     0   :  { %6 = vsyncpa [#allocation3], 0  ;;  %s127_s0 = inlined_call_operand.hbm [shape: f32[8,256], index: 0, kind: input, shape index: {}]   ;;  %s128_s1 = inlined_call_operand.hbm [shape: f32[8,256], index: 1, kind: output, shape index: {}]  }
   0x1   :  { %7 = vsyncpa [#allocation4], 0  ;;  %s13_s8 = sshll.u32 %s127_s0, 4  ;;  %s108_s9 = smov [#allocation2]   ;;  %s14_s8 = int_to_ptr.hbm [resolvable:$true] %s13_s8 }
   0x2   :  { %s15_s10 = sshll.u32 %s108_s9, 4  ;;  %s16_s10 = int_to_ptr.vmem [resolvable:$true] %s15_s10 }
   0x3   :  { %18 = dma.hbm_to_vmem [thread:$0]  %s14_s8, 256, %s16_s10, [#allocation3]  }
   0x4   :  { %104 = dma.done.wait [#allocation3], 256  }
   0x5   :  { %105 = vsyncadd [#allocation3], 4294967040  ;;  %v23_v0 = vld [vmem:[#allocation2] sm:$0xff]  ;;  %s109_s11 = smov 1   ;;  %v24_v1 = vld [vmem:[#allocation2 + $0x8] sm:$0xff]  ;;  %v29_v2 = vlaneseq  ;;  %s110_s12 = smov [#allocation5]  }
   0x6   :  { %25 = vrot.lane.b32.xlu0 %v23_v0, %s109_s11  ;;  %s41_s13 = sshll.u32 %s110_s12, 4  ;;  %s43_s15 = sshll.u32 %s128_s1, 4  ;;  %s42_s13 = int_to_ptr.vmem [resolvable:$true] %s41_s13  ;;  %s44_s15 = int_to_ptr.hbm [resolvable:$true] %s43_s15 }
   0x7   :  { %v30_v4 = vand.u32 127, %v29_v2 }
   0x9   :  { %vm31_vm0 = vcmp.lt.s32.totalorder %v30_v4, 1 }
   0xe   :  { %27 = vrot.lane.b32.xlu0 %v24_v1, %s109_s11 }
  0x78   :  { %v26_v3 = vpop.permute.xlu0 %25 }
  0x80   :  { %v28_v5 = vpop.permute.xlu0 %27 }
  0x81   :  { %v32_v6 = vsel %vm31_vm0, %v26_v3, %v28_v5  ;;  %v33_v7 = vsel %vm31_vm0, %v28_v5, %v26_v3 }
  0x82   :  { %34 = vst [vmem:[#allocation5] sm:$0xff] %v33_v7 }
  0x83   :  { %35 = vst [vmem:[#allocation5 + $0x8] sm:$0xff] %v32_v6 }
  0x84   :  { %46 = dma.vmem_to_hbm [thread:$0]  %s42_s13, 256, %s44_s15, [#allocation4]  }
  0x85   :  { %106 = dma.done.wait [#allocation4], 256  }
  0x86   :  { %107 = vsyncadd [#allocation4], 4294967040 }
  0x87   :  { %51 = vsyncpa [#allocation3], 1 }
  0x88   :  { %52 = vsyncpa [#allocation4], 1 }

</bundles_post_ra>
